<compile_context>
chip_gen: v5e
topology: v5e:2x2
jax: 0.10.0
libtpu: 0.0.40
codegen_flags: <defaults>
</compile_context>

<pallas_src>
from functools import partial

import jax
import jax.numpy as jnp
from jax.experimental import pallas as pl
from jax.experimental.pallas import tpu as pltpu


# --------------------------------------------------------------------------
# Pallas kernel: fused kxk conv + relu + 1x1 conv + residual + per-sample norm
# Per grid step (Nb samples), layouts (lane dim = HW = H*W, lane-dense):
#   x_ref   : (Nb, C, HW)        residual input, NCHW flattened
#   mask_ref: (kH*kW, 1, HW)     precomputed zero-padding masks (f32 0/1)
#   w1_ref  : (Bneck, kH*kW*C)   kxk conv weights, tap-major stacked K dim
#   b1_ref  : (Bneck, 1)
#   w2_ref  : (C, Bneck)         1x1 conv weights
#   b2_ref  : (C, 1)
#   o_ref   : (Nb, C, HW)
# --------------------------------------------------------------------------
def _reslayer_kernel(x_ref, mask_ref, w1_ref, b1_ref, w2_ref, b2_ref, o_ref, *,
                     W, kH, kW, pad, eps):
    Nb, C, HW = x_ref.shape
    n = C * HW

    w1s = w1_ref[...]            # (Bneck, kH*kW*C)
    w2 = w2_ref[...]             # (C, Bneck)
    b1 = b1_ref[...]             # (Bneck, 1)
    b2 = b2_ref[...]             # (C, 1)

    for nb in range(Nb):                                  # static unroll over samples
        xin = x_ref[nb]                                   # (C, HW) f32

        # Stack the kH*kW shifted + masked taps into one (kH*kW*C, HW) RHS.
        # Tap (dy, dx): output i needs input i + s with s = (dy-pad)*W + (dx-pad);
        # roll brings xin[i + s] to i, the host-precomputed mask zeros padding.
        taps = []
        for dy in range(kH):
            for dx in range(kW):
                t = dy * kW + dx
                s = (dy - pad) * W + (dx - pad)
                xs = xin if s == 0 else pltpu.roll(xin, (-s) % HW, axis=1)
                taps.append(xs * mask_ref[t])             # (C, HW) * (1, HW)
        taps = jnp.concatenate(taps, axis=0)              # (kH*kW*C, HW)

        # One fused conv matmul (K = kH*kW*C) + bias + relu.
        h = jnp.dot(w1s, taps, preferred_element_type=jnp.float32)
        h = jnp.maximum(h + b1, 0.0)                      # (Bneck, HW)

        # 1x1 conv + bias + residual.
        y = jnp.dot(w2, h, preferred_element_type=jnp.float32)
        y = y + b2 + xin                                  # (C, HW)

        # Per-sample normalization over all C*H*W elements
        # (torch.std is unbiased -> divide by n-1; eps added to std).
        total = jnp.sum(jnp.sum(y, axis=1, keepdims=True), axis=0, keepdims=True)
        mean = total / n
        d = y - mean
        ssq = jnp.sum(jnp.sum(d * d, axis=1, keepdims=True), axis=0, keepdims=True)
        std = jnp.sqrt(ssq / (n - 1))
        inv = 1.0 / (std + eps)                           # one reciprocal per sample
        o_ref[nb] = d * inv


def _pick_samples_per_block(N, max_nb=8):
    """Largest divisor of N that keeps grid >= 2 (v7x megacore) and <= max_nb."""
    if N <= 1:
        return 1
    target = max(1, min(max_nb, N // 2))
    for nb in range(target, 0, -1):
        if N % nb == 0:
            return nb
    return 1


# --------------------------------------------------------------------------
# Wrapper: no transposes of x, no HBM im2col — reshapes + tiny weight/mask prep.
# --------------------------------------------------------------------------
def res_layer_pallas(x_nchw, w1, b1, w2, b2, eps=1e-6):
    N, C, H, W = x_nchw.shape
    bneck, c_in, kH, kW = w1.shape
    assert c_in == C and kH == kW, "square kernel with matching channels expected"
    pad = kH // 2
    HW = H * W
    K = kH * kW * C

    nb = _pick_samples_per_block(N)
    grid = N // nb

    x_flat = x_nchw.reshape(N, C, HW)                              # NCHW flat, no transpose
    # stacked K dim ordering (dy*kW + dx)*C + c — matches in-kernel tap stacking
    w1s = jnp.transpose(w1, (0, 2, 3, 1)).reshape(bneck, K)
    w2mat = w2[:, :, 0, 0]                                         # (C, Bneck)
    b1m = b1.reshape(bneck, 1)
    b2m = b2.reshape(C, 1)

    # Precompute the per-tap zero-padding masks (loop-invariant data).
    rows = jnp.arange(HW, dtype=jnp.int32) // W
    cols = jnp.arange(HW, dtype=jnp.int32) % W
    masks = []
    for dy in range(kH):
        for dx in range(kW):
            r = rows + (dy - pad)
            c = cols + (dx - pad)
            masks.append(((r >= 0) & (r < H) & (c >= 0) & (c < W)).astype(jnp.float32))
    mask_arr = jnp.stack(masks, axis=0).reshape(kH * kW, 1, HW)

    flops = N * (2 * HW * K * bneck + 2 * HW * bneck * C + HW * K + 12 * HW * C)
    bytes_accessed = 4 * (2 * N * C * HW + mask_arr.size + w1s.size +
                          w2mat.size + bneck + C)

    out_flat = pl.pallas_call(
        partial(_reslayer_kernel, W=W, kH=kH, kW=kW, pad=pad, eps=eps),
        out_shape=jax.ShapeDtypeStruct((N, C, HW), jnp.float32),
        grid=(grid,),
        in_specs=[
            pl.BlockSpec((nb, C, HW), lambda n: (n, 0, 0)),
            pl.BlockSpec((kH * kW, 1, HW), lambda n: (0, 0, 0)),
            pl.BlockSpec((bneck, K), lambda n: (0, 0)),
            pl.BlockSpec((bneck, 1), lambda n: (0, 0)),
            pl.BlockSpec((C, bneck), lambda n: (0, 0)),
            pl.BlockSpec((C, 1), lambda n: (0, 0)),
        ],
        out_specs=pl.BlockSpec((nb, C, HW), lambda n: (n, 0, 0)),
        compiler_params=pltpu.CompilerParams(
            dimension_semantics=("parallel",),            # batch shards across TCs on v7x
            vmem_limit_bytes=32 * 1024 * 1024),           # explicit budget (v7x-safe)
        cost_estimate=pl.CostEstimate(
            flops=flops, transcendentals=2 * N, bytes_accessed=bytes_accessed),
    )(x_flat, mask_arr, w1s, b1m, w2mat, b2m)

    return out_flat.reshape(N, C, H, W)                            # already NCHW


# --------------------------------------------------------------------------
# Pure-JAX reference (mirrors the PyTorch forward exactly)
# --------------------------------------------------------------------------
def res_layer_ref(x_nchw, w1, b1, w2, b2, eps=1e-6):
    pad = w1.shape[2] // 2
    dn = ("NCHW", "OIHW", "NCHW")
    y = jax.lax.conv_general_dilated(x_nchw, w1, (1, 1),
                                     [(pad, pad), (pad, pad)],
                                     dimension_numbers=dn)
    y = y + b1[None, :, None, None]
    y = jnp.maximum(y, 0.0)
    y = jax.lax.conv_general_dilated(y, w2, (1, 1), [(0, 0), (0, 0)],
                                     dimension_numbers=dn)
    y = y + b2[None, :, None, None]
    y = x_nchw + y
    m = jnp.mean(y, axis=(1, 2, 3), keepdims=True)
    s = jnp.std(y, axis=(1, 2, 3), keepdims=True, ddof=1)   # unbiased (torch default)
    return (y - m) / (s + eps)


# --------------------------------------------------------------------------
if __name__ == "__main__":
    # small shapes consistent with the module
    N, out_size, H, W = 2, 4, 16, 16
    bottleneck_size, kernel_size = 8, 3

    key = jax.random.PRNGKey(0)
    kx, kw1, kb1, kw2, kb2 = jax.random.split(key, 5)

    x = jax.random.normal(kx, (N, out_size, H, W), dtype=jnp.float32)

    # deterministic parameter init (synthetic, no checkpoint)
    w1 = 0.1 * jax.random.normal(
        kw1, (bottleneck_size, out_size, kernel_size, kernel_size), jnp.float32)
    b1 = 0.1 * jax.random.normal(kb1, (bottleneck_size,), jnp.float32)
    w2 = 0.1 * jax.random.normal(
        kw2, (out_size, bottleneck_size, 1, 1), jnp.float32)
    b2 = 0.1 * jax.random.normal(kb2, (out_size,), jnp.float32)

    out = res_layer_pallas(x, w1, b1, w2, b2)
    out = jax.block_until_ready(out)

    ref = jax.block_until_ready(res_layer_ref(x, w1, b1, w2, b2))
    assert out.shape == (N, out_size, H, W)
    assert jnp.allclose(out, ref, rtol=1e-4, atol=1e-4), \
        f"max abs err = {jnp.max(jnp.abs(out - ref))}"

    print("KERNEL_OK")
</pallas_src>

<mosaic_0001>
module attributes {stable_mosaic.version = 11 : i64} {
  func.func @_reslayer_kernel(%arg0: i32, %arg1: memref<1x4x256xf32, #tpu.memory_space<vmem>>, %arg2: memref<9x1x256xf32, #tpu.memory_space<vmem>>, %arg3: memref<8x36xf32, #tpu.memory_space<vmem>>, %arg4: memref<8x1xf32, #tpu.memory_space<vmem>>, %arg5: memref<4x8xf32, #tpu.memory_space<vmem>>, %arg6: memref<4x1xf32, #tpu.memory_space<vmem>>, %arg7: memref<1x4x256xf32, #tpu.memory_space<vmem>>) attributes {dimension_semantics = [#tpu.dimension_semantics<parallel>], iteration_bounds = array<i64: 2>, scalar_prefetch = 0 : i64, scratch_operands = 0 : i64, tpu.core_type = #tpu.core_type<tc>, window_params = [{transform_indices = @transform_0, window_bounds = array<i64: 1, 4, 256>}, {pipeline_mode = #tpu.pipeline_mode<synchronous>, transform_indices = @transform_1, window_bounds = array<i64: 9, 1, 256>}, {pipeline_mode = #tpu.pipeline_mode<synchronous>, transform_indices = @transform_2, window_bounds = array<i64: 8, 36>}, {pipeline_mode = #tpu.pipeline_mode<synchronous>, transform_indices = @transform_3, window_bounds = array<i64: 8, 1>}, {pipeline_mode = #tpu.pipeline_mode<synchronous>, transform_indices = @transform_4, window_bounds = array<i64: 4, 8>}, {pipeline_mode = #tpu.pipeline_mode<synchronous>, transform_indices = @transform_5, window_bounds = array<i64: 4, 1>}, {transform_indices = @transform_6, window_bounds = array<i64: 1, 4, 256>}]} {
    %c0 = arith.constant 0 : index
    %c0_0 = arith.constant 0 : index
    %0 = vector.load %arg3[%c0, %c0_0] : memref<8x36xf32, #tpu.memory_space<vmem>>, vector<8x36xf32>
    %c0_1 = arith.constant 0 : index
    %c0_2 = arith.constant 0 : index
    %1 = vector.load %arg5[%c0_1, %c0_2] : memref<4x8xf32, #tpu.memory_space<vmem>>, vector<4x8xf32>
    %c0_3 = arith.constant 0 : index
    %c0_4 = arith.constant 0 : index
    %2 = vector.load %arg4[%c0_3, %c0_4] : memref<8x1xf32, #tpu.memory_space<vmem>>, vector<8x1xf32>
    %c0_5 = arith.constant 0 : index
    %c0_6 = arith.constant 0 : index
    %3 = vector.load %arg6[%c0_5, %c0_6] : memref<4x1xf32, #tpu.memory_space<vmem>>, vector<4x1xf32>
    %c0_7 = arith.constant 0 : index
    %c0_8 = arith.constant 0 : index
    %c0_9 = arith.constant 0 : index
    %4 = vector.load %arg1[%c0_7, %c0_8, %c0_9] : memref<1x4x256xf32, #tpu.memory_space<vmem>>, vector<1x4x256xf32>
    %5 = vector.shape_cast %4 : vector<1x4x256xf32> to vector<4x256xf32>
    %c17_i32 = arith.constant 17 : i32
    %6 = tpu.dynamic_rotate %5 by %c17_i32 dim 1 : vector<4x256xf32>, i32 -> vector<4x256xf32>
    %c0_10 = arith.constant 0 : index
    %c0_11 = arith.constant 0 : index
    %c0_12 = arith.constant 0 : index
    %7 = vector.load %arg2[%c0_10, %c0_11, %c0_12] : memref<9x1x256xf32, #tpu.memory_space<vmem>>, vector<1x1x256xf32>
    %8 = vector.shape_cast %7 : vector<1x1x256xf32> to vector<1x256xf32>
    %9 = vector.broadcast %8 : vector<1x256xf32> to vector<4x256xf32>
    %10 = arith.mulf %6, %9 : vector<4x256xf32>
    %c16_i32 = arith.constant 16 : i32
    %11 = tpu.dynamic_rotate %5 by %c16_i32 dim 1 : vector<4x256xf32>, i32 -> vector<4x256xf32>
    %c1 = arith.constant 1 : index
    %c0_13 = arith.constant 0 : index
    %c0_14 = arith.constant 0 : index
    %12 = vector.load %arg2[%c1, %c0_13, %c0_14] : memref<9x1x256xf32, #tpu.memory_space<vmem>>, vector<1x1x256xf32>
    %13 = vector.shape_cast %12 : vector<1x1x256xf32> to vector<1x256xf32>
    %14 = vector.broadcast %13 : vector<1x256xf32> to vector<4x256xf32>
    %15 = arith.mulf %11, %14 : vector<4x256xf32>
    %c15_i32 = arith.constant 15 : i32
    %16 = tpu.dynamic_rotate %5 by %c15_i32 dim 1 : vector<4x256xf32>, i32 -> vector<4x256xf32>
    %c2 = arith.constant 2 : index
    %c0_15 = arith.constant 0 : index
    %c0_16 = arith.constant 0 : index
    %17 = vector.load %arg2[%c2, %c0_15, %c0_16] : memref<9x1x256xf32, #tpu.memory_space<vmem>>, vector<1x1x256xf32>
    %18 = vector.shape_cast %17 : vector<1x1x256xf32> to vector<1x256xf32>
    %19 = vector.broadcast %18 : vector<1x256xf32> to vector<4x256xf32>
    %20 = arith.mulf %16, %19 : vector<4x256xf32>
    %c1_i32 = arith.constant 1 : i32
    %21 = tpu.dynamic_rotate %5 by %c1_i32 dim 1 : vector<4x256xf32>, i32 -> vector<4x256xf32>
    %c3 = arith.constant 3 : index
    %c0_17 = arith.constant 0 : index
    %c0_18 = arith.constant 0 : index
    %22 = vector.load %arg2[%c3, %c0_17, %c0_18] : memref<9x1x256xf32, #tpu.memory_space<vmem>>, vector<1x1x256xf32>
    %23 = vector.shape_cast %22 : vector<1x1x256xf32> to vector<1x256xf32>
    %24 = vector.broadcast %23 : vector<1x256xf32> to vector<4x256xf32>
    %25 = arith.mulf %21, %24 : vector<4x256xf32>
    %c4 = arith.constant 4 : index
    %c0_19 = arith.constant 0 : index
    %c0_20 = arith.constant 0 : index
    %26 = vector.load %arg2[%c4, %c0_19, %c0_20] : memref<9x1x256xf32, #tpu.memory_space<vmem>>, vector<1x1x256xf32>
    %27 = vector.shape_cast %26 : vector<1x1x256xf32> to vector<1x256xf32>
    %28 = vector.broadcast %27 : vector<1x256xf32> to vector<4x256xf32>
    %29 = arith.mulf %5, %28 : vector<4x256xf32>
    %c255_i32 = arith.constant 255 : i32
    %30 = tpu.dynamic_rotate %5 by %c255_i32 dim 1 : vector<4x256xf32>, i32 -> vector<4x256xf32>
    %c5 = arith.constant 5 : index
    %c0_21 = arith.constant 0 : index
    %c0_22 = arith.constant 0 : index
    %31 = vector.load %arg2[%c5, %c0_21, %c0_22] : memref<9x1x256xf32, #tpu.memory_space<vmem>>, vector<1x1x256xf32>
    %32 = vector.shape_cast %31 : vector<1x1x256xf32> to vector<1x256xf32>
    %33 = vector.broadcast %32 : vector<1x256xf32> to vector<4x256xf32>
    %34 = arith.mulf %30, %33 : vector<4x256xf32>
    %c241_i32 = arith.constant 241 : i32
    %35 = tpu.dynamic_rotate %5 by %c241_i32 dim 1 : vector<4x256xf32>, i32 -> vector<4x256xf32>
    %c6 = arith.constant 6 : index
    %c0_23 = arith.constant 0 : index
    %c0_24 = arith.constant 0 : index
    %36 = vector.load %arg2[%c6, %c0_23, %c0_24] : memref<9x1x256xf32, #tpu.memory_space<vmem>>, vector<1x1x256xf32>
    %37 = vector.shape_cast %36 : vector<1x1x256xf32> to vector<1x256xf32>
    %38 = vector.broadcast %37 : vector<1x256xf32> to vector<4x256xf32>
    %39 = arith.mulf %35, %38 : vector<4x256xf32>
    %c240_i32 = arith.constant 240 : i32
    %40 = tpu.dynamic_rotate %5 by %c240_i32 dim 1 : vector<4x256xf32>, i32 -> vector<4x256xf32>
    %c7 = arith.constant 7 : index
    %c0_25 = arith.constant 0 : index
    %c0_26 = arith.constant 0 : index
    %41 = vector.load %arg2[%c7, %c0_25, %c0_26] : memref<9x1x256xf32, #tpu.memory_space<vmem>>, vector<1x1x256xf32>
    %42 = vector.shape_cast %41 : vector<1x1x256xf32> to vector<1x256xf32>
    %43 = vector.broadcast %42 : vector<1x256xf32> to vector<4x256xf32>
    %44 = arith.mulf %40, %43 : vector<4x256xf32>
    %c239_i32 = arith.constant 239 : i32
    %45 = tpu.dynamic_rotate %5 by %c239_i32 dim 1 : vector<4x256xf32>, i32 -> vector<4x256xf32>
    %c8 = arith.constant 8 : index
    %c0_27 = arith.constant 0 : index
    %c0_28 = arith.constant 0 : index
    %46 = vector.load %arg2[%c8, %c0_27, %c0_28] : memref<9x1x256xf32, #tpu.memory_space<vmem>>, vector<1x1x256xf32>
    %47 = vector.shape_cast %46 : vector<1x1x256xf32> to vector<1x256xf32>
    %48 = vector.broadcast %47 : vector<1x256xf32> to vector<4x256xf32>
    %49 = arith.mulf %45, %48 : vector<4x256xf32>
    %50 = tpu.concatenate %10, %15, %20, %25, %29, %34, %39, %44, %49 in 0 : vector<4x256xf32>, vector<4x256xf32>, vector<4x256xf32>, vector<4x256xf32>, vector<4x256xf32>, vector<4x256xf32>, vector<4x256xf32>, vector<4x256xf32>, vector<4x256xf32> -> vector<36x256xf32>
    %cst = arith.constant dense<0.000000e+00> : vector<8x256xf32>
    %51 = tpu.matmul %0, %50, %cst {dimension_numbers = #tpu.dot_dimension_numbers<[1], [0], [0], [1], [0, 0, 1, 1], [], []>} : vector<8x36xf32>, vector<36x256xf32>, vector<8x256xf32> -> vector<8x256xf32>
    %52 = vector.broadcast %2 : vector<8x1xf32> to vector<8x256xf32>
    %53 = arith.addf %51, %52 : vector<8x256xf32>
    %cst_29 = arith.constant 0.000000e+00 : f32
    %54 = vector.broadcast %cst_29 : f32 to vector<8x256xf32>
    %55 = arith.maximumf %53, %54 : vector<8x256xf32>
    %cst_30 = arith.constant dense<0.000000e+00> : vector<4x256xf32>
    %56 = tpu.matmul %1, %55, %cst_30 {dimension_numbers = #tpu.dot_dimension_numbers<[1], [0], [0], [1], [0, 0, 1, 1], [], []>} : vector<4x8xf32>, vector<8x256xf32>, vector<4x256xf32> -> vector<4x256xf32>
    %57 = vector.broadcast %3 : vector<4x1xf32> to vector<4x256xf32>
    %58 = arith.addf %56, %57 : vector<4x256xf32>
    %59 = arith.addf %58, %5 : vector<4x256xf32>
    %cst_31 = arith.constant dense<0.000000e+00> : vector<4xf32>
    %60 = vector.multi_reduction <add>, %59, %cst_31 [1] : vector<4x256xf32> to vector<4xf32>
    %61 = vector.shape_cast %60 : vector<4xf32> to vector<4x1xf32>
    %cst_32 = arith.constant dense<0.000000e+00> : vector<1xf32>
    %62 = vector.multi_reduction <add>, %61, %cst_32 [0] : vector<4x1xf32> to vector<1xf32>
    %63 = vector.shape_cast %62 : vector<1xf32> to vector<1x1xf32>
    %cst_33 = arith.constant 1.024000e+03 : f32
    %64 = vector.broadcast %cst_33 : f32 to vector<1x1xf32>
    %65 = arith.divf %63, %64 : vector<1x1xf32>
    %66 = vector.broadcast %65 : vector<1x1xf32> to vector<4x256xf32>
    %67 = arith.subf %59, %66 : vector<4x256xf32>
    %68 = arith.mulf %67, %67 : vector<4x256xf32>
    %cst_34 = arith.constant dense<0.000000e+00> : vector<4xf32>
    %69 = vector.multi_reduction <add>, %68, %cst_34 [1] : vector<4x256xf32> to vector<4xf32>
    %70 = vector.shape_cast %69 : vector<4xf32> to vector<4x1xf32>
    %cst_35 = arith.constant dense<0.000000e+00> : vector<1xf32>
    %71 = vector.multi_reduction <add>, %70, %cst_35 [0] : vector<4x1xf32> to vector<1xf32>
    %72 = vector.shape_cast %71 : vector<1xf32> to vector<1x1xf32>
    %cst_36 = arith.constant 1.023000e+03 : f32
    %73 = vector.broadcast %cst_36 : f32 to vector<1x1xf32>
    %74 = arith.divf %72, %73 : vector<1x1xf32>
    %75 = math.sqrt %74 : vector<1x1xf32>
    %cst_37 = arith.constant 9.99999997E-7 : f32
    %76 = vector.broadcast %cst_37 : f32 to vector<1x1xf32>
    %77 = arith.addf %75, %76 : vector<1x1xf32>
    %cst_38 = arith.constant 1.000000e+00 : f32
    %78 = vector.broadcast %cst_38 : f32 to vector<1x1xf32>
    %79 = arith.divf %78, %77 : vector<1x1xf32>
    %80 = vector.broadcast %79 : vector<1x1xf32> to vector<4x256xf32>
    %81 = arith.mulf %67, %80 : vector<4x256xf32>
    %c0_39 = arith.constant 0 : index
    %c0_40 = arith.constant 0 : index
    %c0_41 = arith.constant 0 : index
    %82 = vector.load %arg7[%c0_39, %c0_40, %c0_41] : memref<1x4x256xf32, #tpu.memory_space<vmem>>, vector<1x4x256xf32>
    %83 = vector.shape_cast %82 : vector<1x4x256xf32> to vector<4x256xf32>
    %84 = vector.shape_cast %81 : vector<4x256xf32> to vector<1x4x256xf32>
    tpu.vector_store %arg7[%c0_39, %c0_40, %c0_41], %84 {strides = array<i32>} : memref<1x4x256xf32, #tpu.memory_space<vmem>>, vector<1x4x256xf32>,
    return
  }
  func.func @transform_0(%arg0: i32) -> (i32, i32, i32) {
    %c0_i32 = arith.constant 0 : i32
    %c0_i32_0 = arith.constant 0 : i32
    %c0_i32_1 = arith.constant 0 : i32
    return %arg0, %c0_i32, %c0_i32_0 : i32, i32, i32
  }
  func.func @transform_1(%arg0: i32) -> (i32, i32, i32) {
    %c0_i32 = arith.constant 0 : i32
    %c0_i32_0 = arith.constant 0 : i32
    %c0_i32_1 = arith.constant 0 : i32
    %c0_i32_2 = arith.constant 0 : i32
    return %c0_i32, %c0_i32_0, %c0_i32_1 : i32, i32, i32
  }
  func.func @transform_2(%arg0: i32) -> (i32, i32) {
    %c0_i32 = arith.constant 0 : i32
    %c0_i32_0 = arith.constant 0 : i32
    %c0_i32_1 = arith.constant 0 : i32
    return %c0_i32, %c0_i32_0 : i32, i32
  }
  func.func @transform_3(%arg0: i32) -> (i32, i32) {
    %c0_i32 = arith.constant 0 : i32
    %c0_i32_0 = arith.constant 0 : i32
    %c0_i32_1 = arith.constant 0 : i32
    return %c0_i32, %c0_i32_0 : i32, i32
  }
  func.func @transform_4(%arg0: i32) -> (i32, i32) {
    %c0_i32 = arith.constant 0 : i32
    %c0_i32_0 = arith.constant 0 : i32
    %c0_i32_1 = arith.constant 0 : i32
    return %c0_i32, %c0_i32_0 : i32, i32
  }
  func.func @transform_5(%arg0: i32) -> (i32, i32) {
    %c0_i32 = arith.constant 0 : i32
    %c0_i32_0 = arith.constant 0 : i32
    %c0_i32_1 = arith.constant 0 : i32
    return %c0_i32, %c0_i32_0 : i32, i32
  }
  func.func @transform_6(%arg0: i32) -> (i32, i32, i32) {
    %c0_i32 = arith.constant 0 : i32
    %c0_i32_0 = arith.constant 0 : i32
    %c0_i32_1 = arith.constant 0 : i32
    return %arg0, %c0_i32, %c0_i32_0 : i32, i32, i32
  }
}

</mosaic_0001>

<bundles_post_ra>
// kernel: tpu_custom_call.1
= control target key start
LH: loop header
LB: loop body
LE: loop exit
PB: predicated region body
PF: predicated region fallthrough
CT: control target
= control target key end

     0   :  { %11 = vsyncpa [#allocation3], 0  ;;  %s1298_s0 = inlined_call_operand.hbm [shape: f32[2,4,256], index: 0, kind: input, shape index: {}]   ;;  %s1299_s1 = inlined_call_operand.hbm [shape: f32[9,1,256], index: 1, kind: input, shape index: {}]   ;;  %s1300_s2 = inlined_call_operand.vmem [shape: f32[8,36], index: 2, kind: input, shape index: {}]   ;;  %s1301_s3 = inlined_call_operand.vmem [shape: f32[8,1], index: 3, kind: input, shape index: {}]   ;;  %s1302_s4 = inlined_call_operand.vmem [shape: f32[4,8], index: 4, kind: input, shape index: {}]   ;;  %s1303_s5 = inlined_call_operand.vmem [shape: f32[4,1], index: 5, kind: input, shape index: {}]   ;;  %s1304_s6 = inlined_call_operand.hbm [shape: f32[2,4,256], index: 6, kind: output, shape index: {}]  }
   0x1   :  { %13 = vsyncpa [#allocation3 + $0x1], 0 }
   0x2   :  { %14 = vsyncpa [#allocation6], 0 }
   0x3   :  { %15 = vsyncpa [#allocation4], 0 }
   0x4   :  { %17 = vsyncpa [#allocation4 + $0x1], 0  ;;  %s1086_s21 = smov 0   ;;  %s1088_s22 = smov 0  }
   0x5   :  { %s1090_s23 = smov 0   ;;  %s1092_s24 = smov 0  }
   0x6 LB: > { %s196_s27 = sshll.u32 %s1299_s1, 4  ;;  %s1110_s28 = sadd.s32 4294967295, %s1035_s24   ;;  %s1035_s24 = sphi %s1092_s24, %s1314_s24   ;;  %s1031_s23 = sphi %s1090_s23, %s1313_s23   ;;  %s1027_s22 = sphi %s1088_s22, %s1312_s22   ;;  %s1023_s21 = sphi %s1086_s21, %s1311_s21   ;;  %s197_s27 = int_to_ptr.hbm [resolvable:$true] %s196_s27 }
   0x7   : > { %p801_p0 = scmp.ge.s32.totalorder %s1035_s24, 1  ;;  %p44_p1 = scmp.eq.s32.totalorder %s1110_s28, 0 }
   0x8   : > { %p185_p2 = scmp.lt.s32.totalorder %s1035_s24, 3  ;;  %s1037_s30 = smov [#allocation5]  }
   0x9   : > { %s198_s7 = sshll.u32 %s1037_s30, 4  ;;  %s1038_s8 = smov 32   ;;  %s199_s7 = int_to_ptr.vmem [resolvable:$true] %s198_s7 }
   0xa   : > { %p1115_p3 = pnand %p801_p0, %p185_p2  ;;  %s1039_s9 = smov 2  }
   0xb   : > { %s800_s10 = sadd.s32 4294967294, %s1035_s24   ;;  %s1126_s11 = sadd.s32 1, %s1035_s24  }
   0xc   : > { %p832_p4 = pneg %p1115_p3  ;;  %s30_s12 = sadd.s32 1, %s1031_s23 }
   0xd   : > { %s27_s13 = ssub.s32 %s1035_s24, %s1126_s11  ;;  %p37_p7 = scmp.ne.s32.totalorder %s1031_s23, %s1027_s22 }
   0xe   : > { %p833_p6 = pnand %p832_p4, %p44_p1  ;;  %p28_p8 = scmp.eq.s32.totalorder %s27_s13, 0 }
   0xf   : > { %p38_p9 = scmp.eq.s32.totalorder %s1035_s24, 0  ;;  %p43_p10 = scmp.ne.s32.totalorder %s1027_s22, %s1023_s21 }
  0x10   : > { %835 = dma.hbm_to_vmem [thread:$0]  (!%p833_p6), %s197_s27, 288, %s199_s7, [#allocation6], %s1038_s8, %s1038_s8, %s1039_s9  }
  0x11   : > { %p172_p11 = scmp.eq.s32.totalorder %s1110_s28, 1  ;;  %p1142_p12 = por %p44_p1, %p43_p10 }
  0x12   : > { %s1138_s14 = scalar_select %p28_p8, %s1031_s23, %s30_s12  }
  0x13   : > { %p1146_p13 = por %p172_p11, %p37_p7  ;;  %p178_p0 = scmp.eq.s32.totalorder %s800_s10, 1 }
  0x14   : > { %p39_p2 = por %p38_p9, %p37_p7  ;;  %s224_s17 = sand.u32 1, %s1031_s23  }
  0x15   : > { %p1151_p4 = por %p178_p0, %p43_p10  ;;  %p845_p6 = scmp.lt.s32.totalorder %s1035_s24, 2 }
  0x16   : > { %s804_s19 = sshll.u32 %s224_s17, 3  ;;  %s822_s20 = sshll.u32 %s1035_s24, 3 }
  0x17   : > { %s233_s27 = scalar_lea.hbm %s1298_s0, %s822_s20  ;;  %s228_s7 = scalar_lea.vmem [#allocation2], %s804_s19 }
  0x18   : > { %s235_s30 = sshll.u32 %s233_s27, 4  ;;  %s237_s8 = sshll.u32 %s228_s7, 4  ;;  %s236_s30 = int_to_ptr.hbm [resolvable:$true] %s235_s30  ;;  %s238_s8 = int_to_ptr.vmem [resolvable:$true] %s237_s8 }
  0x19   : > { %p1160_p8 = pnand %p845_p6, %p39_p2  ;;  %s225_s10 = scalar_lea.sflag [#allocation3], %s224_s17 }
  0x1a   : > { %s935_s12 = sshra.s32 %s236_s30, 4  ;;  %s942_s19 = scalar_lea.hbm %s1298_s0, 16  ;;  %s936_s12 = int_to_ptr.hbm [resolvable:$true] %s935_s12 }
  0x1b   : > { %s937_s13 = scalar_lea.hbm %s936_s12, 8  ;;  %p939_p9 = pneg %p1160_p8 }
  0x1c   : > { %p938_p7 = scmp.ne.s32.totalorder %s936_s12, %s937_s13  ;;  %p943_p0 = scmp.lt.s32.totalorder %s936_s12, %s1298_s0 }
  0x1d   : > { %p944_p2 = scmp.lt.s32.totalorder %s942_s19, %s937_s13 }
  0x1e   : > { %p940_p10 = pnand %p939_p9, %p938_p7 }
  0x1f   : > { %p945_p6 = por %p944_p2, %p943_p0 }
  0x20   : > { %p941_p11 = pneg %p940_p10 }
  0x22   : > { %p946_p5 = pnand %p945_p6, %p941_p11 }
  0x24   : > { %949 = shalt.err (!%p946_p5)
}
  0x25   : > { %839 = dma.hbm_to_vmem [thread:$0]  (!%p1160_p8), %s236_s30, 128, %s238_s8, %s225_s10  }
  0x26   : > { %246 = sbr.rel (%p1115_p3) target bundleno = 836 (0x344), region = 44  ;;  %s1177_s17 = sand.u32 (!%p1115_p3), 1, %s1027_s22  }
  0x27   : > { %s808_s7 = sshll.u32 (!%p1115_p3), %s1177_s17, 3  ;;  %s249_s20 = scalar_lea.sflag (!%p1115_p3), [#allocation3], %s1177_s17 }
  0x28   : > { %s252_s12 = scalar_lea.vmem (!%p1115_p3), [#allocation2], %s808_s7 }
  0x2b   : > { %1010 = dma.done.wait (%p1142_p12), %s249_s20, 128  }
  0x2c   : > { %1012 = vsyncadd (%p1142_p12), %s249_s20, 4294967168 }
  0x2d   : > { %1014 = dma.done.wait (%p44_p1), [#allocation6], 288  }
  0x2e   : > { %1016 = vsyncadd (%p44_p1), [#allocation6], 4294967008  ;;  %v291_v0 = vld [vmem:[%s252_s12] sm:$0xff]  ;;  %s1040_s29 = smov 16   ;;  %s1041_s15 = smov 15   ;;  %vm384_vm0 = vcmask 1043456   ;;  %v302_v35 = vlaneseq }
  0x2f   : > { %293 = vst [vmem:[#allocation1] ss:$2 sm:$0xff] %v291_v0  ;;  %s1042_s30 = smov 1   ;;  %s1043_s8 = smov 127   ;;  %v379_v17 = vld [vmem:[#allocation5 + $0x8] sm:$0x3] }
  0x30   : > { %s1044_s9 = smov 113   ;;  %s1045_s10 = smov 112   ;;  %v382_v18 = vperm.slane %v379_v17, 1  ;;  %v381_v19 = vperm.slane %v379_v17, 0  ;;  %v289_v34 = vld [vmem:[%s1301_s3] sm:$0xff]  ;;  %v1048_v36 = vmov 0  }
  0x31   : > { %s1046_s13 = smov 17   ;;  %s1047_s25 = smov 111   ;;  %894 = vset.pattern.permute.xlu1 %v1048_v36  ;;  %895 = vset.pattern.permute.xlu2 %v1048_v36  ;;  %v1207_v37 = vand.u32 127, %v302_v35  ;;  %v443_v38 = vld [vmem:[#allocation5 + $0xe] sm:$0x3]  ;;  %vm515_vm9 = vcmask 293888  }
  0x32   : > { %v383_v21 = vrot.slane %v382_v18, 4  ;;  %896 = vset.pattern.permute.xlu0 %v1048_v36  ;;  %v1210_v39 = vld [vmem:[#allocation5 + $0x2] sm:$0x3]  ;;  %v401_v40 = vld [vmem:[#allocation5 + $0xa] sm:$0x3]  ;;  %v445_v44 = vperm.slane %v443_v38, 0 }
  0x33   : > { %vm439_vm1 = vcmp.lt.s32.totalorder %v1207_v37, 112  ;;  %v370_v43 = vld [vmem:[#allocation5 + $0x6] sm:$0x3]  ;;  %vm397_vm2 = vcmp.lt.s32.totalorder %v1207_v37, 127  ;;  %v446_v45 = vperm.slane %v443_v38, 1  ;;  %v403_v49 = vperm.slane %v401_v40, 0 }
  0x34   : > { %v385_v22 = vsel %vm384_vm0, %v381_v19, %v383_v21  ;;  %v404_v50 = vperm.slane %v401_v40, 1  ;;  %v464_v51 = vld [vmem:[#allocation5 + $0x10] sm:$0x3]  ;;  %v330_v52 = vperm.slane %v1210_v39, 0  ;;  %v372_v53 = vperm.slane %v370_v43, 0 }
  0x35   : > { %v387_v23 = vmul.f32 %v385_v22, %v291_v0  ;;  %v422_v54 = vld [vmem:[#allocation5 + $0xc] sm:$0x3]  ;;  %vm366_vm3 = vcmp.lt.s32.totalorder %v1207_v37, 1  ;;  %vm418_vm4 = vcmp.lt.s32.totalorder %v1207_v37, 113  ;;  %v373_v59 = vperm.slane %v370_v43, 1 }
  0x36   : > { %v294_v1 = vld.sshfl [vmem:[#allocation1] sm:$0xff pattern:$0x75316420]  ;;  %v295_v2 = vld.sshfl [vmem:[#allocation1 + $0x8] sm:$0xff pattern:$0x75316420] }
  0x37   : > { %315 = vst [vmem:[#allocation1] ss:$2 sm:$0xff] %v291_v0  ;;  %vm460_vm5 = vcmp.lt.s32.totalorder %v1207_v37, 111  ;;  %v466_v60 = vperm.slane %v464_v51, 0  ;;  %v467_v61 = vperm.slane %v464_v51, 1  ;;  %v424_v62 = vperm.slane %v422_v54, 0 }
  0x38   : > { %v425_v63 = vperm.slane %v422_v54, 1  ;;  %vm324_vm6 = vcmp.lt.s32.totalorder %v1207_v37, 16  ;;  %v349_v19 = vld [vmem:[#allocation5 + $0x4] sm:$0x3]  ;;  %vm304_vm7 = vcmp.lt.s32.totalorder %v1207_v37, 17  ;;  %vm345_vm8 = vcmp.lt.s32.totalorder %v1207_v37, 15 }
  0x39   : > { %v290_v54 = vld [vmem:[%s1303_s5] sm:$0xf]  ;;  %vm572_vm10 = vcmask 64512  }
  0x3e   : > { %v316_v3 = vld.sshfl [vmem:[#allocation1] sm:$0xff pattern:$0x75316420]  ;;  %v317_v4 = vld.sshfl [vmem:[#allocation1 + $0x8] sm:$0xff pattern:$0x75316420] }
  0x3f   : > { %336 = vst [vmem:[#allocation1] ss:$2 sm:$0xff] %v291_v0  ;;  %320 = vrot.lane.b32.xlu1 %v316_v3, %s1040_s29  ;;  %322 = vrot.lane.b32.xlu2 %v317_v4, %s1040_s29 }
  0x46   : > { %v337_v5 = vld.sshfl [vmem:[#allocation1] sm:$0xff pattern:$0x75316420]  ;;  %v338_v6 = vld.sshfl [vmem:[#allocation1 + $0x8] sm:$0xff pattern:$0x75316420] }
  0x47   : > { %341 = vrot.lane.b32.xlu0 %v337_v5, %s1041_s15  ;;  %357 = vst [vmem:[#allocation1] ss:$2 sm:$0xff] %v291_v0 }
  0x4e   : > { %v358_v7 = vld.sshfl [vmem:[#allocation1] sm:$0xff pattern:$0x75316420]  ;;  %v359_v8 = vld.sshfl [vmem:[#allocation1 + $0x8] sm:$0xff pattern:$0x75316420] }
  0x4f   : > { %364 = vrot.lane.b32.xlu0 %v359_v8, %s1042_s30  ;;  %388 = vst [vmem:[#allocation1] ss:$2 sm:$0xff] %v291_v0  ;;  %362 = vrot.lane.b32.xlu2 %v358_v7, %s1042_s30 }
  0x56   : > { %v389_v9 = vld.sshfl [vmem:[#allocation1] sm:$0xff pattern:$0x75316420]  ;;  %v390_v10 = vld.sshfl [vmem:[#allocation1 + $0x8] sm:$0xff pattern:$0x75316420] }
  0x57   : > { %409 = vst [vmem:[#allocation1] ss:$2 sm:$0xff] %v291_v0  ;;  %393 = vrot.lane.b32.xlu2 %v389_v9, %s1043_s8 }
  0x5e   : > { %v410_v11 = vld.sshfl [vmem:[#allocation1] sm:$0xff pattern:$0x75316420]  ;;  %v411_v12 = vld.sshfl [vmem:[#allocation1 + $0x8] sm:$0xff pattern:$0x75316420] }
  0x5f   : > { %414 = vrot.lane.b32.xlu0 %v410_v11, %s1044_s9  ;;  %416 = vrot.lane.b32.xlu1 %v411_v12, %s1044_s9  ;;  %430 = vst [vmem:[#allocation1] ss:$2 sm:$0xff] %v291_v0  ;;  %v307_v12 = vld [vmem:[#allocation5] sm:$0x3] }
  0x60   : > { %395 = vrot.lane.b32.xlu2 %v390_v10, %s1043_s8  ;;  %v331_v10 = vperm.slane %v1210_v39, 1  ;;  %s823_s8 = sshll.u32 %s1110_s28, 3  ;;  %s704_s28 = scalar_lea.sflag [#allocation4], %s1177_s17 }
  0x66   : > { %v431_v13 = vld.sshfl [vmem:[#allocation1] sm:$0xff pattern:$0x75316420]  ;;  %v432_v14 = vld.sshfl [vmem:[#allocation1 + $0x8] sm:$0xff pattern:$0x75316420] }
  0x67   : > { %435 = vrot.lane.b32.xlu0 %v431_v13, %s1045_s10  ;;  %451 = vst [vmem:[#allocation1] ss:$2 sm:$0xff] %v291_v0 }
  0x68   : > { %298 = vrot.lane.b32.xlu2 %v294_v1, %s1046_s13 }
  0x6e   : > { %v452_v15 = vld.sshfl [vmem:[#allocation1] sm:$0xff pattern:$0x75316420]  ;;  %v453_v16 = vld.sshfl [vmem:[#allocation1 + $0x8] sm:$0xff pattern:$0x75316420] }
  0x6f   : > { %437 = vrot.lane.b32.xlu0 %v432_v14, %s1045_s10  ;;  %456 = vrot.lane.b32.xlu1 %v452_v15, %s1047_s25  ;;  %485 = vst [vmem:[#allocation1] ss:$2 sm:$0xff] %v387_v23 }
  0x70   : > { %569 = vperm.xlu2 %895, %v290_v54  }
  0x76   : > { %v1198_v26 = vld.sshfl [vmem:[#allocation1] sm:$0xff pattern:$0x75316420]  ;;  %v1200_v27 = vld.sshfl [vmem:[#allocation1 + $0x8] sm:$0xff pattern:$0x75316420] }
  0x77   : > { %300 = vrot.lane.b32.xlu0 %v295_v2, %s1046_s13  ;;  %458 = vrot.lane.b32.xlu1 %v453_v16, %s1047_s25  ;;  %616 = vst [vmem:[#allocation1] ss:$2 sm:$0xff] %v291_v0  ;;  %s715_s13 = scalar_lea.hbm %s1304_s6, %s823_s8  ;;  %s286_s25 = scalar_lea.vmem [#allocation7], %s808_s7 }
  0x78   : > { %s717_s19 = sshll.u32 %s286_s25, 4  ;;  %s719_s26 = sshll.u32 %s715_s13, 4  ;;  %s718_s19 = int_to_ptr.vmem [resolvable:$true] %s717_s19  ;;  %s720_s26 = int_to_ptr.hbm [resolvable:$true] %s719_s26 }
  0x79   : > { %s979_s27 = sshra.s32 %s720_s26, 4  ;;  %s985_s7 = scalar_lea.hbm %s1304_s6, 16  ;;  %s980_s27 = int_to_ptr.hbm [resolvable:$true] %s979_s27 }
  0x7a   : > { %s981_s20 = scalar_lea.hbm %s980_s27, 8  ;;  %p986_p12 = scmp.lt.s32.totalorder %s980_s27, %s1304_s6 }
  0x7b   : > { %p982_p1 = scmp.ne.s32.totalorder %s980_s27, %s981_s20  ;;  %p987_p8 = scmp.lt.s32.totalorder %s985_s7, %s981_s20 }
  0x7d   : > { %p983_p3 = pnand %p982_p1, %p1146_p13  ;;  %p988_p7 = por %p987_p8, %p986_p12 }
  0x7f   : > { %343 = vrot.lane.b32.xlu1 %v338_v6, %s1041_s15  ;;  %p984_p5 = pneg %p983_p3 }
  0x81   : > { %p989_p9 = pnand %p988_p7, %p984_p5 }
  0x87   : > { %512 = vperm.xlu1 %894, %v289_v34   ;;  %v310_v34 = vperm.slane %v307_v12, 1 }
  0x99   : > { %v1196_v24 = vpop.permute.xlu2 %322 }
  0xa9   : > { %v363_v29 = vpop.permute.xlu2 %362 }
  0xb1   : > { %v1202_v28 = vpop.permute.xlu1 %320  ;;  %v394_v32 = vpop.permute.xlu2 %393 }
  0xb2   : > { %v325_v21 = vsel %vm324_vm6, %v1202_v28, %v1196_v24  ;;  %v326_v22 = vsel %vm324_vm6, %v1196_v24, %v1202_v28  ;;  %v351_v24 = vperm.slane %v349_v19, 0  ;;  %v352_v28 = vperm.slane %v349_v19, 1 }
  0xb3   : > { %v334_v40 = vmul.f32 %v330_v52, %v326_v22  ;;  %v287_v52 = vld [vmem:[%s1300_s2] sm:$0xff] }
  0xb9   : > { %v1193_v20 = vpop.permute.xlu0 %341 }
  0xba   : > { %v396_v46 = vpop.permute.xlu2 %395 }
  0xbb   : > { %v398_v55 = vsel %vm397_vm2, %v394_v32, %v396_v46  ;;  %v399_v56 = vsel %vm397_vm2, %v396_v46, %v394_v32 }
  0xbc   : > { %v407_v0 = vmul.f32 %v403_v49, %v398_v55  ;;  %v408_v1 = vmul.f32 %v404_v50, %v399_v56  ;;  %v474_v50 = vrot.slane %v334_v40, 4 }
  0xbe   : > { %v492_v17 = vrot.slane %v407_v0, 4  ;;  %v493_v18 = vrot.slane %v408_v1, 4  ;;  %v617_v1 = vld.sshfl [vmem:[#allocation1] sm:$0xff pattern:$0x75316420] }
  0xc0   : > { %v506_v38 = vsel %vm384_vm0, %v1198_v26, %v492_v17  ;;  %v507_v39 = vsel %vm384_vm0, %v1200_v27, %v493_v18 }
  0xc1   : > { %v365_v25 = vpop.permute.xlu0 %364 }
  0xc2   : > { %v368_v2 = vsel %vm366_vm3, %v365_v25, %v363_v29  ;;  %v367_v11 = vsel %vm366_vm3, %v363_v29, %v365_v25  ;;  %v299_v25 = vpop.permute.xlu2 %298 }
  0xc3   : > { %v376_v23 = vmul.f32 %v372_v53, %v368_v2 }
  0xc5   : > { %v480_v43 = vrot.slane %v376_v23, 4 }
  0xd1   : > { %v415_v30 = vpop.permute.xlu0 %414  ;;  %v417_v31 = vpop.permute.xlu1 %416 }
  0xd2   : > { %v419_v3 = vsel %vm418_vm4, %v415_v30, %v417_v31  ;;  %v420_v4 = vsel %vm418_vm4, %v417_v31, %v415_v30  ;;  %v377_v30 = vmul.f32 %v373_v59, %v367_v11  ;;  %v309_v31 = vperm.slane %v307_v12, 0 }
  0xd3   : > { %v428_v15 = vmul.f32 %v424_v62, %v419_v3  ;;  %v429_v16 = vmul.f32 %v425_v63, %v420_v4  ;;  %v288_v62 = vld [vmem:[%s1302_s4] sm:$0xf]  ;;  %v570_v63 = vpop.permute.xlu2 %569  ;;  %v618_v3 = vld.sshfl [vmem:[#allocation1 + $0x8] sm:$0xff pattern:$0x75316420]  ;;  %v1049_v11 = vmov 1024.0  }
  0xd4   : > { %897 = vrcp.f32 %v1049_v11 }
  0xd9   : > { %v436_v33 = vpop.permute.xlu0 %435 }
  0xda   : > { %v898_v12 = vpop.eup %897 }
  0xdb   : > { %vm640_vm11 = vweird.f32 %v898_v12 }
  0xe1   : > { %v438_v41 = vpop.permute.xlu0 %437  ;;  %v457_v42 = vpop.permute.xlu1 %456 }
  0xe2   : > { %v440_v47 = vsel %vm439_vm1, %v436_v33, %v438_v41  ;;  %v441_v48 = vsel %vm439_vm1, %v438_v41, %v436_v33  ;;  %v335_v41 = vmul.f32 %v331_v10, %v325_v21 }
  0xe3   : > { %v449_v57 = vmul.f32 %v445_v44, %v440_v47  ;;  %v450_v58 = vmul.f32 %v446_v45, %v441_v48  ;;  %v481_v44 = vrot.slane %v377_v30, 4 }
  0xe4   : > { %v475_v26 = vrot.slane %v335_v41, 4 }
  0xe5   : > { %v498_v6 = vrot.slane %v449_v57, 4  ;;  %v499_v7 = vrot.slane %v450_v58, 4 }
  0xe7   : > { %v508_v32 = vsel %vm384_vm0, %v428_v15, %v498_v6  ;;  %v509_v33 = vsel %vm384_vm0, %v429_v16, %v499_v7 }
  0xe9   : > { %v459_v5 = vpop.permute.xlu1 %458  ;;  %v301_v29 = vpop.permute.xlu0 %300 }
  0xea   : > { %v461_v8 = vsel %vm460_vm5, %v457_v42, %v459_v5  ;;  %v462_v9 = vsel %vm460_vm5, %v459_v5, %v457_v42  ;;  %v305_v35 = vsel %vm304_vm7, %v299_v25, %v301_v29  ;;  %v306_v36 = vsel %vm304_vm7, %v301_v29, %v299_v25 }
  0xeb   : > { %v470_v13 = vmul.f32 %v466_v60, %v461_v8  ;;  %v471_v14 = vmul.f32 %v467_v61, %v462_v9  ;;  %v313_v46 = vmul.f32 %v309_v31, %v306_v36  ;;  %v314_v47 = vmul.f32 %v310_v34, %v305_v35 }
  0xed   : > { %811 = vmatpush.msk.msra.mxu0 %vm384_vm0, %v470_v13  ;;  %813 = vmatpush.msk.msra.mxu1 %vm384_vm0, %v471_v14  ;;  %v502_v53 = vsel %vm384_vm0, %v313_v46, %v474_v50  ;;  %v636_v13 = vmul.f32 1024.0, %v898_v12 }
  0xef   : > { %537 = vmatpush.msra.mxu0 %v508_v32  ;;  %557 = vmatpush.msra.mxu1 %v509_v33  ;;  %v637_v14 = vsub.f32 1.0, %v636_v13 }
  0xf1   : > { %v344_v42 = vpop.permute.xlu1 %343  ;;  %538 = vmatpush.msra.mxu0 %v506_v38  ;;  %558 = vmatpush.msra.mxu1 %v507_v39  ;;  %v638_v18 = vmul.f32 %v898_v12, %v637_v14  ;;  %v1050_v38 = vmov 1023.0  }
  0xf2   : > { %v346_v45 = vsel %vm345_vm8, %v1193_v20, %v344_v42  ;;  %v347_v37 = vsel %vm345_vm8, %v344_v42, %v1193_v20  ;;  %v503_v20 = vsel %vm384_vm0, %v314_v47, %v475_v26  ;;  %899 = vrcp.f32 %v1050_v38 }
  0xf3   : > { %v355_v48 = vmul.f32 %v351_v24, %v347_v37  ;;  %v356_v49 = vmul.f32 %v352_v28, %v346_v45  ;;  %v639_v22 = vadd.f32 %v898_v12, %v638_v18 }
  0xf5   : > { %v504_v51 = vsel %vm384_vm0, %v355_v48, %v480_v43  ;;  %v505_v27 = vsel %vm384_vm0, %v356_v49, %v481_v44  ;;  %v641_v29 = vsel %vm640_vm11, %v898_v12, %v639_v22 }
  0xf6   : > { %539 = vmatpush.msra.mxu0 %v504_v51  ;;  %559 = vmatpush.msra.mxu1 %v505_v27 }
  0xf8   : > { %540 = vmatpush.msra.mxu0 %v502_v53  ;;  %560 = vmatpush.msra.mxu1 %v503_v20  ;;  %v900_v39 = vpop.eup %899 }
  0xf9   : > { %812 = vmatmul.msk.f32.vlgmr.msra.gmra.mxu0 %vm515_vm9, %v287_v52  ;;  %814 = vmatmul.msk.f32.vlgmr.msra.gmra.mxu1 %vm515_vm9, %v287_v52  ;;  %v513_v55 = vpop.permute.xlu1 %512  ;;  %v660_v40 = vmul.f32 1023.0, %v900_v39  ;;  %vm664_vm12 = vweird.f32 %v900_v39 }
  0xfb   : > { %v661_v41 = vsub.f32 1.0, %v660_v40 }
  0xfd   : > { %v662_v45 = vmul.f32 %v900_v39, %v661_v41 }
  0xff   : > { %v663_v47 = vadd.f32 %v900_v39, %v662_v45 }
 0x101   : > { %v665_v50 = vsel %vm664_vm12, %v900_v39, %v663_v47 }
 0x176   : > { %v542_v56 = vpop.f32.mrf.mxu0  ;;  %v562_v57 = vpop.f32.mrf.mxu1 }
 0x177   : > { %v543_v58 = vadd.f32 %v542_v56, %v513_v55  ;;  %v563_v59 = vadd.f32 %v562_v57, %v513_v55 }
 0x179   : > { %v565_v60 = vmax.f32 %v543_v58, 0.0  ;;  %v566_v61 = vmax.f32 %v563_v59, 0.0 }
 0x17b   : > { %591 = vmatpush.msra.mxu2 %v565_v60  ;;  %611 = vmatpush.msra.mxu3 %v566_v61 }
 0x17c   : > { %815 = vmatmul.msk.f32.vlgmr.msra.gmra.mxu2 %vm572_vm10, %v288_v62  ;;  %816 = vmatmul.msk.f32.vlgmr.msra.gmra.mxu3 %vm572_vm10, %v288_v62 }
 0x1ff   : > { %v593_v0 = vpop.f32.mrf.mxu2  ;;  %v613_v2 = vpop.f32.mrf.mxu3 }
 0x200   : > { %v594_v4 = vadd.f32 %v593_v0, %v570_v63  ;;  %v614_v5 = vadd.f32 %v613_v2, %v570_v63 }
 0x202   : > { %v621_v6 = vadd.f32 %v617_v1, %v594_v4  ;;  %v622_v7 = vadd.f32 %v618_v3, %v614_v5 }
 0x204   : > { %v623_v8 = vsel %vm384_vm0, %v621_v6, 0.0  ;;  %v624_v9 = vsel %vm384_vm0, %v622_v7, 0.0 }
 0x205   : > { %v625_v10 = vadd.f32 %v624_v9, %v623_v8 }
 0x207   : > { %626 = vadd.xlane.f32.xlu0 %v625_v10 }
 0x27a   : > { %v627_v15 = vpop.xlane.xlu0 %626 }
 0x27b   : > { %v628_v16 = vsel %vm384_vm0, %v627_v15, 0.0 }
 0x27c   : > { %v629_v17 = vrot.slane %v628_v16, 4 }
 0x27e   : > { %v630_v19 = vadd.f32 %v629_v17, %v628_v16 }
 0x280   : > { %v631_v21 = vrot.slane %v630_v19, 2 }
 0x282   : > { %v632_v23 = vadd.f32 %v631_v21, %v630_v19 }
 0x284   : > { %v633_v25 = vrot.slane %v632_v23, 1 }
 0x286   : > { %v634_v30 = vadd.f32 %v633_v25, %v632_v23 }
 0x288   : > { %v642_v31 = vmul.f32 %v641_v29, %v634_v30 }
 0x28a   : > { %v643_v32 = vsub.f32 %v621_v6, %v642_v31  ;;  %v644_v33 = vsub.f32 %v622_v7, %v642_v31 }
 0x28c   : > { %v645_v34 = vmul.f32 %v643_v32, %v643_v32  ;;  %v646_v24 = vmul.f32 %v644_v33, %v644_v33 }
 0x28e   : > { %v647_v28 = vsel %vm384_vm0, %v645_v34, 0.0  ;;  %v648_v35 = vsel %vm384_vm0, %v646_v24, 0.0 }
 0x28f   : > { %v649_v36 = vadd.f32 %v648_v35, %v647_v28 }
 0x291   : > { %650 = vadd.xlane.f32.xlu1 %v649_v36 }
 0x304   : > { %v651_v42 = vpop.xlane.xlu1 %650 }
 0x305   : > { %v652_v43 = vsel %vm384_vm0, %v651_v42, 0.0 }
 0x306   : > { %v653_v44 = vrot.slane %v652_v43, 4 }
 0x308   : > { %v654_v37 = vadd.f32 %v653_v44, %v652_v43 }
 0x30a   : > { %v655_v46 = vrot.slane %v654_v37, 2 }
 0x30c   : > { %v656_v48 = vadd.f32 %v655_v46, %v654_v37 }
 0x30e   : > { %v657_v49 = vrot.slane %v656_v48, 1 }
 0x310   : > { %v658_v26 = vadd.f32 %v657_v49, %v656_v48 }
 0x312   : > { %v666_v51 = vmul.f32 %v665_v50, %v658_v26 }
 0x314   : > { %901 = vrsqrt.f32 %v666_v51  ;;  %vm674_vm13 = vcmp.eq.f32.partialorder %v666_v51, inf  ;;  %v677_v57 = vand.u32 2147483648, %v666_v51  ;;  %vm676_vm14 = vcmp.eq.f32.partialorder %v666_v51, 0.0 }
 0x31a   : > { %v902_v27 = vpop.eup %901 }
 0x31b   : > { %v668_v52 = vmul.f32 %v902_v27, %v666_v51 }
 0x31d   : > { %v669_v53 = vmul.f32 %v902_v27, %v668_v52 }
 0x31f   : > { %v670_v20 = vmul.f32 0.5, %v669_v53 }
 0x321   : > { %v671_v54 = vsub.f32 1.5, %v670_v20 }
 0x323   : > { %v672_v55 = vmul.f32 %v902_v27, %v671_v54 }
 0x325   : > { %v673_v56 = vmul.f32 %v672_v55, %v666_v51 }
 0x327   : > { %v675_v58 = vsel %vm674_vm13, %v666_v51, %v673_v56 }
 0x328   : > { %v678_v59 = vsel %vm676_vm14, %v677_v57, %v675_v58 }
 0x329   : > { %v679_v60 = vadd.f32 1e-06, %v678_v59 }
 0x32b   : > { %903 = vrcp.f32 %v679_v60  ;;  %v691_v0 = vand.u32 2147483648, %v679_v60  ;;  %v689_v2 = vand.u32 2147483647, %v679_v60  ;;  %vm685_vm1 = vweird.f32 %v679_v60 }
 0x32d   : > { %v692_v4 = vor.u32 1.1754944e-38, %v691_v0  ;;  %vm690_vm3 = vcmp.eq.f32.partialorder %v689_v2, 8.507059e+37 }
 0x331   : > { %v904_v61 = vpop.eup %903 }
 0x332   : > { %v681_v62 = vmul.f32 %v904_v61, %v679_v60  ;;  %vm686_vm15 = vweird.f32 %v904_v61 }
 0x333   : > { %vm687_vm2 = vmor %vm685_vm1, %vm686_vm15 }
 0x334   : > { %v682_v63 = vsub.f32 1.0, %v681_v62 }
 0x336   : > { %v683_v1 = vmul.f32 %v904_v61, %v682_v63 }
 0x338   : > { %v684_v3 = vadd.f32 %v904_v61, %v683_v1 }
 0x33a   : > { %v688_v5 = vsel %vm687_vm2, %v904_v61, %v684_v3 }
 0x33b   : > { %v693_v6 = vsel %vm690_vm3, %v692_v4, %v688_v5 }
 0x33c   : > { %v696_v7 = vmul.f32 %v693_v6, %v644_v33  ;;  %v695_v8 = vmul.f32 %v693_v6, %v643_v32 }
 0x33e   : > { %v699_v9 = vrot.slane %v696_v7, 4 }
 0x340   : > { %v700_v10 = vsel %vm384_vm0, %v695_v8, %v699_v9 }
 0x341   : > { %702 = vst [vmem:[%s286_s25] sm:$0xff] %v700_v10 }
 0x342   : > { %992 = shalt.err (!%p989_p9)
}
 0x343   : > { %830 = dma.vmem_to_hbm [thread:$0]  (%p1146_p13), %s718_s19, 128, %s720_s26, %s704_s28  }
 0x344 PF: > { %s731_s17 = sand.u32 1, %s1023_s21   ;;  %p1310_p10 = scmp.ge.s32.totalorder %s1035_s24, 2 }
 0x345   : > { %s732_s8 = scalar_lea.sflag [#allocation4], %s731_s17 }
 0x346   : > { %p841_p11 = pnand %p1310_p10, %p1151_p4 }
 0x348   : > { %p842_p0 = pneg %p841_p11 }
 0x34a   : > { %1018 = dma.done.wait (%p842_p0), %s732_s8, 128  }
 0x34b   : > { %1020 = vsyncadd (%p842_p0), %s732_s8, 4294967168  ;;  %p20_p2 = scmp.ge.s32.totalorder %s1126_s11, 4   ;;  %s1311_s21 = smov %s1027_s22 }
 0x34c   : > { %s1312_s22 = smov %s1031_s23  ;;  %s1313_s23 = smov %s1138_s14 }
 0x34d   : > { %s1314_s24 = smov %s1126_s11  ;;  %22 = sbr.rel (!%p20_p2) target bundleno = 6 (0x6), region = 101 }
 0x352   :  { %738 = vsyncpa [#allocation3], 1 }
 0x353   :  { %740 = vsyncpa [#allocation3 + $0x1], 1 }
 0x354   :  { %741 = vsyncpa [#allocation6], 1 }
 0x355   :  { %742 = vsyncpa [#allocation4], 1 }
 0x356   :  { %744 = vsyncpa [#allocation4 + $0x1], 1 }

</bundles_post_ra>
